<compile_context>
chip_gen: v6e
topology: v6e:2x2x1
jax: 0.10.0
libtpu: 0.0.40
codegen_flags: <defaults>
</compile_context>

<pallas_src>
import functools

import numpy as np
import jax
import jax.numpy as jnp
from jax.experimental import pallas as pl
from jax.experimental.pallas import tpu as pltpu


# ----------------------------- device heuristics -----------------------------

def _round_up(x, m):
    return ((x + m - 1) // m) * m


try:
    _KIND = jax.devices()[0].device_kind.lower()
except Exception:  # pragma: no cover
    _KIND = ""
_IS_V6 = "v6" in _KIND
_IS_V7 = "v7" in _KIND
# v6e / v7x MXU is 256-wide; v5e (and older) prefer 128-wide N tiles.
_TN_WIDE = 256 if (_IS_V6 or _IS_V7) else 128
_NUM_TC = 2 if _IS_V7 else 1              # v7x has 2 TensorCores per chip
_TK_CAP = 2048 if _IS_V6 else 1024        # v6e: 128 MiB VMEM; v7x/v5e: keep K tiles small
_TM_FLAT = 256 if (_IS_V6 or _IS_V7) else 128   # v5e: smaller flat-conv tiles (1 vst slot)
_VMEM_LIMIT = 100 * 1024 * 1024 if _IS_V6 else None


def _cparams(sem):
    if _VMEM_LIMIT is not None:
        return pltpu.CompilerParams(dimension_semantics=sem,
                                    vmem_limit_bytes=_VMEM_LIMIT)
    return pltpu.CompilerParams(dimension_semantics=sem)


def _pick_tn(cout):
    if cout % _TN_WIDE == 0:
        return _TN_WIDE
    if cout % 128 == 0:
        return 128
    return cout  # e.g. 64 (full dim; lane-sparse, only layer1 / conv1)


def _pick_tk(k):
    """Largest 128-multiple divisor of k not exceeding the per-chip K-tile cap."""
    if k <= _TK_CAP:
        return k
    d = (_TK_CAP // 128) * 128
    while d >= 128:
        if k % d == 0:
            return d
        d -= 128
    return 128


def _kpad(k):
    """Pad K (A's lane dim) to a 128 multiple unless it is already small (<=128)."""
    if k <= 128 or k % 128 == 0:
        return k
    return _round_up(k, 128)


# ----------------------------- Pallas kernels -----------------------------

def _mm_single_kernel(*refs, act, has_res):
    """Single-K-step matmul + folded BN (+residual) (+ReLU). No scratch, no K axis."""
    if has_res:
        a_ref, b_ref, s_ref, c_ref, r_ref, o_ref = refs
    else:
        a_ref, b_ref, s_ref, c_ref, o_ref = refs
        r_ref = None
    y = jnp.dot(a_ref[...], b_ref[...], preferred_element_type=jnp.float32)
    y = y * s_ref[...] + c_ref[...]
    if r_ref is not None:
        y = y + r_ref[...].astype(jnp.float32)
    if act:
        y = jnp.maximum(y, 0.0)
    o_ref[...] = y.astype(o_ref.dtype)


def _mm_multi_kernel(*refs, act, has_res):
    """K-tiled matmul with f32 VMEM accumulator + fused epilogue on the last step."""
    if has_res:
        a_ref, b_ref, s_ref, c_ref, r_ref, o_ref, acc_ref = refs
    else:
        a_ref, b_ref, s_ref, c_ref, o_ref, acc_ref = refs
        r_ref = None
    k = pl.program_id(2)

    @pl.when(k == 0)
    def _init():
        acc_ref[...] = jnp.zeros_like(acc_ref)

    acc_ref[...] += jnp.dot(a_ref[...], b_ref[...],
                            preferred_element_type=jnp.float32)

    @pl.when(k == pl.num_programs(2) - 1)
    def _finalize():
        y = acc_ref[...] * s_ref[...] + c_ref[...]
        if r_ref is not None:
            y = y + r_ref[...].astype(jnp.float32)
        if act:
            y = jnp.maximum(y, 0.0)
        o_ref[...] = y.astype(o_ref.dtype)


def _conv3x3_flat_kernel(x_ref, w_ref, s_ref, c_ref, o_ref, *, wq, tm):
    """3x3/stride-1/pad-1 conv on a flattened padded image with aligned tap loads.

    x_ref:  (3, span, Cin) -- three dj-shifted copies of the padded+flattened image,
            so tap (di, dj) for output flat row r is x_ref[dj, r + di*wq, :].
            wq % 16 == 0 and tm % 16 == 0, hence every pl.ds start is 16-aligned.
    w_ref:  (9, Cin, tn) per-tap weights (bf16).
    o_ref:  (tm, tn)  output rows [i*tm, i*tm+tm) of the padded-flat output grid.
    """
    base = pl.multiple_of(pl.program_id(1) * tm, 16)
    acc = None
    for di in range(3):
        off = pl.multiple_of(base + di * wq, 16)
        part = None
        for dj in range(3):
            a = x_ref[dj, pl.ds(off, tm), :]
            d = jnp.dot(a, w_ref[di * 3 + dj],
                        preferred_element_type=jnp.float32)
            part = d if part is None else part + d
        acc = part if acc is None else acc + part
    y = acc * s_ref[...] + c_ref[...]
    o_ref[...] = jnp.maximum(y, 0.0).astype(o_ref.dtype)


def _maxpool_phase_kernel(e00_ref, e01_ref, e10_ref, e11_ref, o_ref, *, ho, wo):
    """3x3/s2/p1 max-pool from the 4 stride-2 phases of the padded input."""
    e00 = e00_ref[...]
    e01 = e01_ref[...]
    e10 = e10_ref[...]
    e11 = e11_ref[...]
    m = e11[:ho, :wo]                            # tap (1,1)
    m = jnp.maximum(m, e00[:ho, :wo])            # (0,0)
    m = jnp.maximum(m, e00[:ho, 1:wo + 1])       # (0,2)
    m = jnp.maximum(m, e00[1:ho + 1, :wo])       # (2,0)
    m = jnp.maximum(m, e00[1:ho + 1, 1:wo + 1])  # (2,2)
    m = jnp.maximum(m, e01[:ho, :wo])            # (0,1)
    m = jnp.maximum(m, e01[1:ho + 1, :wo])       # (2,1)
    m = jnp.maximum(m, e10[:ho, :wo])            # (1,0)
    m = jnp.maximum(m, e10[:ho, 1:wo + 1])       # (1,2)
    o_ref[...] = m.astype(o_ref.dtype)


def _avgpool_kernel(x_ref, o_ref):
    o_ref[...] = jnp.mean(x_ref[...].astype(jnp.float32), axis=1)


# --------------------------- Pallas call wrappers ---------------------------

@functools.partial(jax.jit, static_argnames=("act",))
def matmul_bn_act(a, b, scale, shift, residual, act):
    """Fused (conv-as-matmul) + folded BN + optional residual add + optional ReLU."""
    m, ka = a.shape
    kb, cout = b.shape
    a = a.astype(jnp.bfloat16)
    b = b.astype(jnp.bfloat16)
    if ka < kb:                      # weights were pre-padded along K at build time
        a = jnp.pad(a, ((0, 0), (0, kb - ka)))
    k = kb

    tn = _pick_tn(cout)
    tm = 256 if m >= 256 else (m if m % 16 == 0 else _round_up(m, 16))
    m_pad = _round_up(m, tm)
    # v7x: make sure both TensorCores get at least one parallel tile.
    if _NUM_TC > 1:
        while ((m_pad // tm) * (cout // tn) < _NUM_TC and tn > 128
               and cout % (tn // 2) == 0):
            tn //= 2
        while ((m_pad // tm) * (cout // tn) < _NUM_TC and tm >= 32
               and (tm // 2) % 8 == 0):
            tm //= 2
    tk = _pick_tk(k)
    nk = k // tk

    if m_pad != m:
        a = jnp.pad(a, ((0, m_pad - m), (0, 0)))
    s2 = scale.astype(jnp.float32).reshape(1, cout)
    c2 = shift.astype(jnp.float32).reshape(1, cout)

    has_res = residual is not None
    if has_res:
        r = residual.astype(jnp.bfloat16)
        if m_pad != m:
            r = jnp.pad(r, ((0, m_pad - m), (0, 0)))

    if nk == 1:
        in_specs = [
            pl.BlockSpec((tm, k), lambda i, j: (i, 0)),
            pl.BlockSpec((k, tn), lambda i, j: (0, j)),
            pl.BlockSpec((1, tn), lambda i, j: (0, j)),
            pl.BlockSpec((1, tn), lambda i, j: (0, j)),
        ]
        args = [a, b, s2, c2]
        if has_res:
            in_specs.append(pl.BlockSpec((tm, tn), lambda i, j: (i, j)))
            args.append(r)
        out = pl.pallas_call(
            functools.partial(_mm_single_kernel, act=act, has_res=has_res),
            out_shape=jax.ShapeDtypeStruct((m_pad, cout), jnp.bfloat16),
            grid=(m_pad // tm, cout // tn),
            in_specs=in_specs,
            out_specs=pl.BlockSpec((tm, tn), lambda i, j: (i, j)),
            compiler_params=_cparams(("parallel", "parallel")),
        )(*args)
    else:
        in_specs = [
            pl.BlockSpec((tm, tk), lambda i, j, kk: (i, kk)),
            pl.BlockSpec((tk, tn), lambda i, j, kk: (kk, j)),
            pl.BlockSpec((1, tn), lambda i, j, kk: (0, j)),
            pl.BlockSpec((1, tn), lambda i, j, kk: (0, j)),
        ]
        args = [a, b, s2, c2]
        if has_res:
            in_specs.append(pl.BlockSpec((tm, tn), lambda i, j, kk: (i, j)))
            args.append(r)
        out = pl.pallas_call(
            functools.partial(_mm_multi_kernel, act=act, has_res=has_res),
            out_shape=jax.ShapeDtypeStruct((m_pad, cout), jnp.bfloat16),
            grid=(m_pad // tm, cout // tn, nk),
            in_specs=in_specs,
            out_specs=pl.BlockSpec((tm, tn), lambda i, j, kk: (i, j)),
            scratch_shapes=[pltpu.VMEM((tm, tn), jnp.float32)],
            compiler_params=_cparams(("parallel", "parallel", "arbitrary")),
        )(*args)
    return out[:m] if m_pad != m else out


@jax.jit
def conv3x3_s1_flat(x, w9, scale, shift):
    """3x3, stride 1, pad 1 conv + BN + ReLU without im2col (flat-offset trick)."""
    n, h, w, cin = x.shape
    cout = w9.shape[-1]
    hp = h + 2
    wq = _round_up(w + 2, 16)            # sublane-aligned padded width
    m_full = hp * wq
    tm = _TM_FLAT if m_full >= _TM_FLAT else _round_up(m_full, 16)
    m_pad = _round_up(m_full, tm)
    span = m_pad + 2 * wq
    tn = _pick_tn(cout)

    x = x.astype(jnp.bfloat16)
    # zero pad: 1 row top/bottom, 1 col left, (wq - w - 1) cols right
    xp = jnp.pad(x, ((0, 0), (1, 1), (1, wq - w - 1), (0, 0)))
    flat = xp.reshape(n, m_full, cin)
    lead = wq + 1                        # xbuf[k] == flat[k - (wq + 1)]
    total = span + 2
    xbuf = jnp.pad(flat, ((0, 0), (lead, total - lead - m_full), (0, 0)))
    # three dj-shifted, sublane-aligned views of the flat buffer: (n, 3, span, cin)
    xsh = jnp.stack([xbuf[:, dj:dj + span, :] for dj in range(3)], axis=1)

    kernel = functools.partial(_conv3x3_flat_kernel, wq=wq, tm=tm)
    out = pl.pallas_call(
        kernel,
        out_shape=jax.ShapeDtypeStruct((n, m_pad, cout), jnp.bfloat16),
        grid=(n, m_pad // tm, cout // tn),
        in_specs=[
            pl.BlockSpec((None, 3, span, cin), lambda b, i, j: (b, 0, 0, 0)),
            pl.BlockSpec((9, cin, tn), lambda b, i, j: (0, 0, j)),
            pl.BlockSpec((1, tn), lambda b, i, j: (0, j)),
            pl.BlockSpec((1, tn), lambda b, i, j: (0, j)),
        ],
        out_specs=pl.BlockSpec((None, tm, tn), lambda b, i, j: (b, i, j)),
        compiler_params=_cparams(("parallel", "parallel", "parallel")),
    )(xsh, w9.astype(jnp.bfloat16),
      scale.astype(jnp.float32).reshape(1, cout),
      shift.astype(jnp.float32).reshape(1, cout))
    # TODO(synk): the halo ring is still computed and cropped here (one XLA slice per
    # conv2); keeping the padded-flat layout across the bottleneck would remove it.
    out = out[:, :m_full, :].reshape(n, hp, wq, cout)[:, 1:1 + h, 1:1 + w, :]
    return out


@jax.jit
def maxpool_3x3_s2_p1(x):
    """nn.MaxPool2d(kernel_size=3, stride=2, padding=1). x: NHWC (bf16)."""
    n, h, w, c = x.shape
    ho = (h - 1) // 2 + 1
    wo = (w - 1) // 2 + 1
    p = ho + 1
    q = _round_up(wo + 1, 8)             # sublane-aligned phase width
    xp = jnp.pad(x, ((0, 0), (1, 2 * p - h - 1), (1, 2 * q - w - 1), (0, 0)),
                 constant_values=float("-inf"))
    # TODO(synk): the stride-2 phase split still happens in XLA; an in-kernel strided
    # extraction would save one HBM pass over the largest feature map.
    e = xp.reshape(n, p, 2, q, 2, c)
    e00 = e[:, :, 0, :, 0, :]
    e01 = e[:, :, 0, :, 1, :]
    e10 = e[:, :, 1, :, 0, :]
    e11 = e[:, :, 1, :, 1, :]
    ct = 128 if c % 128 == 0 else c
    kernel = functools.partial(_maxpool_phase_kernel, ho=ho, wo=wo)
    return pl.pallas_call(
        kernel,
        out_shape=jax.ShapeDtypeStruct((n, ho, wo, c), x.dtype),
        grid=(n, c // ct),
        in_specs=[pl.BlockSpec((None, p, q, ct), lambda b, cc: (b, 0, 0, cc))] * 4,
        out_specs=pl.BlockSpec((None, ho, wo, ct), lambda b, cc: (b, 0, 0, cc)),
        compiler_params=_cparams(("parallel", "parallel")),
    )(e00, e01, e10, e11)


@jax.jit
def global_avgpool(x):
    """nn.AdaptiveAvgPool2d((1, 1)). x: NHWC -> (N, C) in f32. Single block."""
    n, h, w, c = x.shape
    x3 = x.reshape(n, h * w, c)
    return pl.pallas_call(
        _avgpool_kernel,
        out_shape=jax.ShapeDtypeStruct((n, c), jnp.float32),
        grid=(1,),
        in_specs=[pl.BlockSpec((n, h * w, c), lambda i: (0, 0, 0))],
        out_specs=pl.BlockSpec((n, c), lambda i: (0, 0)),
        compiler_params=_cparams(("arbitrary",)),
    )(x3)


# ------------------------------- Glue (JAX) -------------------------------

def _im2col(x, kh, kw, stride, pad):
    """x: NHWC (bf16) -> (N*Ho*Wo, kh*kw*Cin) patches (zero padded)."""
    n, h, w, c = x.shape
    if pad > 0:
        x = jnp.pad(x, ((0, 0), (pad, pad), (pad, pad), (0, 0)))
    hp, wp = h + 2 * pad, w + 2 * pad
    ho = (hp - kh) // stride + 1
    wo = (wp - kw) // stride + 1
    cols = []
    for di in range(kh):
        for dj in range(kw):
            cols.append(x[:, di:di + stride * (ho - 1) + 1:stride,
                          dj:dj + stride * (wo - 1) + 1:stride, :])
    patches = jnp.concatenate(cols, axis=-1)
    return patches.reshape(n * ho * wo, kh * kw * c), (n, ho, wo)


def conv_bn(x, p, stride, pad, act, residual=None):
    """Conv2d(bias=False) + BatchNorm2d (eval) + optional residual + ReLU. x: NHWC."""
    kh, kw = p["kh"], p["kw"]
    cout = p["w"].shape[1]
    n = x.shape[0]
    if kh == 1 and kw == 1 and pad == 0:
        xs = x[:, ::stride, ::stride, :] if stride > 1 else x
        _, ho, wo, cin = xs.shape
        cols = xs.reshape(n * ho * wo, cin)
    elif kh == 3 and kw == 3 and stride == 1 and pad == 1 and act and residual is None:
        return conv3x3_s1_flat(x, p["w9"], p["scale"], p["shift"])
    else:
        # TODO(synk): conv1 (7x7/s2) and the 3 strided 3x3 convs still go through
        # im2col; an in-kernel stride-2 tap accumulation would avoid the 9x patches.
        cols, (n, ho, wo) = _im2col(x, kh, kw, stride, pad)
    res2 = residual.reshape(n * ho * wo, cout) if residual is not None else None
    out = matmul_bn_act(cols, p["w"], p["scale"], p["shift"], res2, act=act)
    return out.reshape(n, ho, wo, cout)


def bottleneck(x, bp):
    out = conv_bn(x, bp["conv1"], stride=1, pad=0, act=True)
    out = conv_bn(out, bp["conv2"], stride=bp["stride"], pad=1, act=True)
    if bp["downsample"] is not None:
        identity = conv_bn(x, bp["downsample"], stride=bp["stride"], pad=0, act=False)
    else:
        identity = x
    # conv3 with BN + residual add + ReLU fused into the matmul epilogue
    return conv_bn(out, bp["conv3"], stride=1, pad=0, act=True, residual=identity)


def resnet101_forward(x_nchw, params):
    x = jnp.transpose(x_nchw, (0, 2, 3, 1)).astype(jnp.bfloat16)  # NCHW -> NHWC bf16
    x = conv_bn(x, params["conv1"], stride=2, pad=3, act=True)
    x = maxpool_3x3_s2_p1(x)
    for layer_blocks in params["layers"]:
        for bp in layer_blocks:
            x = bottleneck(x, bp)
    pooled = global_avgpool(x)                 # (N, 2048) f32
    return pooled[:, :, None, None]            # (N, 2048, 1, 1), like PyTorch


# ------------------------ deterministic parameter init ------------------------

def _make_conv_bn(key, kh, kw, cin, cout):
    kw_key, g_key, b_key = jax.random.split(key, 3)
    fan_in = kh * kw * cin
    w = jax.random.normal(kw_key, (fan_in, cout), jnp.float32) * np.sqrt(2.0 / fan_in)
    gamma = 1.0 + 0.05 * jax.random.normal(g_key, (cout,), jnp.float32)
    beta = 0.05 * jax.random.normal(b_key, (cout,), jnp.float32)
    eps = 1e-5
    # eval-mode BN folded: running_mean = 0, running_var = 1
    scale = (gamma / jnp.sqrt(1.0 + eps)).reshape(1, cout)
    shift = beta.reshape(1, cout)
    k_pad = _kpad(fan_in)
    w_mm = w if k_pad == fan_in else jnp.pad(w, ((0, k_pad - fan_in), (0, 0)))
    p = {"w": w_mm.astype(jnp.bfloat16), "scale": scale, "shift": shift,
         "kh": kh, "kw": kw}
    if kh == 3 and kw == 3:
        # per-tap weights for the flat 3x3 conv kernel; K ordering is (di, dj, cin)
        p["w9"] = w.reshape(9, cin, cout).astype(jnp.bfloat16)
    return p


def build_resnet101_params(key):
    params = {}
    params["conv1"] = _make_conv_bn(jax.random.fold_in(key, 0), 7, 7, 3, 64)
    cfg = [(64, 3, 1), (128, 4, 2), (256, 23, 2), (512, 3, 2)]  # resnet101
    expansion = 4
    inplanes = 64
    layers = []
    block_id = 1
    for planes, nblocks, layer_stride in cfg:
        blocks = []
        for b in range(nblocks):
            s = layer_stride if b == 0 else 1
            bkey = jax.random.fold_in(key, block_id)
            block_id += 1
            k1, k2, k3, k4 = jax.random.split(bkey, 4)
            bp = {
                "stride": s,
                "conv1": _make_conv_bn(k1, 1, 1, inplanes, planes),
                "conv2": _make_conv_bn(k2, 3, 3, planes, planes),
                "conv3": _make_conv_bn(k3, 1, 1, planes, planes * expansion),
                "downsample": (_make_conv_bn(k4, 1, 1, inplanes, planes * expansion)
                               if b == 0 else None),
            }
            blocks.append(bp)
            inplanes = planes * expansion
        layers.append(blocks)
    params["layers"] = layers
    return params


# ----------------------------------- main -----------------------------------

if __name__ == "__main__":
    key = jax.random.PRNGKey(0)
    pkey, xkey = jax.random.split(key)
    params = build_resnet101_params(pkey)
    # small spatial input (32x32) consistent with the module's 3-channel conv1
    x = jax.random.normal(xkey, (2, 3, 32, 32), jnp.float32)
    out = resnet101_forward(x, params)
    out = jax.block_until_ready(out)
    assert out.shape == (2, 2048, 1, 1), out.shape
    assert bool(jnp.all(jnp.isfinite(out)))
    print("KERNEL_OK")
</pallas_src>

<mosaic_0001>
module attributes {stable_mosaic.version = 11 : i64} {
  func.func @_mm_single_kernel(%arg0: i32, %arg1: i32, %arg2: memref<256x256xbf16, #tpu.memory_space<vmem>>, %arg3: memref<256x64xbf16, #tpu.memory_space<vmem>>, %arg4: memref<1x64xf32, #tpu.memory_space<vmem>>, %arg5: memref<1x64xf32, #tpu.memory_space<vmem>>, %arg6: memref<256x64xbf16, #tpu.memory_space<vmem>>) attributes {dimension_semantics = [#tpu.dimension_semantics<parallel>, #tpu.dimension_semantics<parallel>], iteration_bounds = array<i64: 2, 1>, scalar_prefetch = 0 : i64, scratch_operands = 0 : i64, tpu.core_type = #tpu.core_type<tc>, window_params = [{transform_indices = @transform_0, window_bounds = array<i64: 256, 256>}, {transform_indices = @transform_1, window_bounds = array<i64: 256, 64>}, {transform_indices = @transform_2, window_bounds = array<i64: 1, 64>}, {transform_indices = @transform_3, window_bounds = array<i64: 1, 64>}, {transform_indices = @transform_4, window_bounds = array<i64: 256, 64>}]} {
    %c0 = arith.constant 0 : index
    %c0_0 = arith.constant 0 : index
    %0 = vector.load %arg2[%c0, %c0_0] : memref<256x256xbf16, #tpu.memory_space<vmem>>, vector<256x256xbf16>
    %c0_1 = arith.constant 0 : index
    %c0_2 = arith.constant 0 : index
    %1 = vector.load %arg3[%c0_1, %c0_2] : memref<256x64xbf16, #tpu.memory_space<vmem>>, vector<256x64xbf16>
    %cst = arith.constant dense<0.000000e+00> : vector<256x64xf32>
    %2 = tpu.matmul %0, %1, %cst {dimension_numbers = #tpu.dot_dimension_numbers<[1], [0], [0], [1], [0, 0, 1, 1], [], []>} : vector<256x256xbf16>, vector<256x64xbf16>, vector<256x64xf32> -> vector<256x64xf32>
    %c0_3 = arith.constant 0 : index
    %c0_4 = arith.constant 0 : index
    %3 = vector.load %arg4[%c0_3, %c0_4] : memref<1x64xf32, #tpu.memory_space<vmem>>, vector<1x64xf32>
    %4 = vector.broadcast %3 : vector<1x64xf32> to vector<256x64xf32>
    %5 = arith.mulf %2, %4 : vector<256x64xf32>
    %c0_5 = arith.constant 0 : index
    %c0_6 = arith.constant 0 : index
    %6 = vector.load %arg5[%c0_5, %c0_6] : memref<1x64xf32, #tpu.memory_space<vmem>>, vector<1x64xf32>
    %7 = vector.broadcast %6 : vector<1x64xf32> to vector<256x64xf32>
    %8 = arith.addf %5, %7 : vector<256x64xf32>
    %cst_7 = arith.constant 0.000000e+00 : f32
    %9 = vector.broadcast %cst_7 : f32 to vector<256x64xf32>
    %10 = arith.maximumf %8, %9 : vector<256x64xf32>
    %11 = arith.truncf %10 : vector<256x64xf32> to vector<256x64xbf16>
    %c0_8 = arith.constant 0 : index
    %c0_9 = arith.constant 0 : index
    %12 = vector.load %arg6[%c0_8, %c0_9] : memref<256x64xbf16, #tpu.memory_space<vmem>>, vector<256x64xbf16>
    tpu.vector_store %arg6[%c0_8, %c0_9], %11 {strides = array<i32>} : memref<256x64xbf16, #tpu.memory_space<vmem>>, vector<256x64xbf16>,
    return
  }
  func.func @transform_0(%arg0: i32, %arg1: i32) -> (i32, i32) {
    %c0_i32 = arith.constant 0 : i32
    %c0_i32_0 = arith.constant 0 : i32
    return %arg0, %c0_i32 : i32, i32
  }
  func.func @transform_1(%arg0: i32, %arg1: i32) -> (i32, i32) {
    %c0_i32 = arith.constant 0 : i32
    %c0_i32_0 = arith.constant 0 : i32
    return %c0_i32, %arg1 : i32, i32
  }
  func.func @transform_2(%arg0: i32, %arg1: i32) -> (i32, i32) {
    %c0_i32 = arith.constant 0 : i32
    %c0_i32_0 = arith.constant 0 : i32
    return %c0_i32, %arg1 : i32, i32
  }
  func.func @transform_3(%arg0: i32, %arg1: i32) -> (i32, i32) {
    %c0_i32 = arith.constant 0 : i32
    %c0_i32_0 = arith.constant 0 : i32
    return %c0_i32, %arg1 : i32, i32
  }
  func.func @transform_4(%arg0: i32, %arg1: i32) -> (i32, i32) {
    %c0_i32 = arith.constant 0 : i32
    return %arg0, %arg1 : i32, i32
  }
}

</mosaic_0001>

<bundles_post_ra>
// kernel: matmul_bn_act.1
= control target key start
LH: loop header
LB: loop body
LE: loop exit
PB: predicated region body
PF: predicated region fallthrough
CT: control target
= control target key end

     0   :  { %s1531_s15 = smov 0   ;;  %s1533_s16 = smov 0   ;;  %s1790_s0 = inlined_call_operand.vmem [shape: bf16[512,256], index: 0, kind: input, shape index: {}]   ;;  %s1791_s1 = inlined_call_operand.vmem [shape: bf16[256,64], index: 1, kind: input, shape index: {}]   ;;  %s1792_s2 = inlined_call_operand.vmem [shape: f32[1,64], index: 2, kind: input, shape index: {}]   ;;  %s1793_s3 = inlined_call_operand.vmem [shape: f32[1,64], index: 3, kind: input, shape index: {}]   ;;  %s1794_s4 = inlined_call_operand.vmem [shape: bf16[512,64], index: 4, kind: output, shape index: {}]  }
   0x1   :  { %s1535_s17 = smov 0  }
   0x2 LB: > { %s26_s18 = sadd.s32 1, %s1500_s16  ;;  %p1143_p0 = scmp.ge.s32.totalorder %s1504_s17, 1  ;;  %s1504_s17 = sphi %s1535_s17, %s14_s17   ;;  %s1500_s16 = sphi %s1533_s16, %s1796_s16   ;;  %s1496_s15 = sphi %s1531_s15, %s1795_s15  }
   0x3   : > { %p28_p1 = scmp.ge.s32.totalorder %s26_s18, 2  ;;  %p203_p2 = scmp.lt.s32.totalorder %s1504_s17, 3 }
   0x5   : > { %s1798_s18 = smov (%p28_p1, %s26_s18), 0  ;;  %p204_p3 = pnand %p1143_p0, %p203_p2 }
   0x6   : > { %s1144_s21 = sshll.u32 (!%p204_p3), %s1496_s15, 5 }
   0x7   : > { %207 = sbr.rel (%p204_p3) target bundleno = 311 (0x137), region = 36  ;;  %p244_p4 = scmp.lt.s32.totalorder (!%p204_p3), %s1144_s21, 63 }
   0xc   : > { %v1418_v0 = vld [vmem:[%s1791_s1 + $0x78] sm:$0xff]   ;;  %v1420_v2 = vld [vmem:[%s1791_s1 + $0x70] sm:$0xff]   ;;  %v1422_v4 = vld [vmem:[%s1791_s1 + $0x68] sm:$0xff]   ;;  %s1800_s21 = smov (!%p244_p4, %s1144_s21), 63  ;;  %vm989_vm0 = vcmask 519168  }
   0xd   : > { %v1419_v1 = vld [vmem:[%s1791_s1 + $0x38] sm:$0xff]   ;;  %1266 = vmatprep.subr.bf16.mxu0 %v1418_v0  ;;  %1378 = vmatprep.subr.bf16.mxu1 %v1418_v0  ;;  %v1421_v3 = vld [vmem:[%s1791_s1 + $0x30] sm:$0xff]   ;;  %v1423_v5 = vld [vmem:[%s1791_s1 + $0x28] sm:$0xff]   ;;  %s1233_s10 = sshll.u32 %s1800_s21, 3  ;;  %s1148_s12 = sshll.u32 %s1800_s21, 2 }
   0xe   : > { %1267 = vmatpush3.bf16.msra.mxu0 %v1419_v1  ;;  %1386 = vmatpush3.bf16.msra.mxu1 %v1419_v1  ;;  %v1424_v6 = vld [vmem:[%s1791_s1 + $0x60] sm:$0xff]   ;;  %v1426_v8 = vld [vmem:[%s1791_s1 + $0x58] sm:$0xff]   ;;  %s1582_s15 = scalar_lea.vmem %s1790_s0, %s1233_s10  ;;  %v1428_v10 = vld [vmem:[%s1791_s1 + $0x50] sm:$0xff]  }
   0xf   : > { %1268 = vmatprep.subr.bf16.mxu0 %v1420_v2  ;;  %1379 = vmatprep.subr.bf16.mxu1 %v1420_v2  ;;  %v1425_v7 = vld [vmem:[%s1791_s1 + $0x20] sm:$0xff]   ;;  %v1427_v9 = vld [vmem:[%s1791_s1 + $0x18] sm:$0xff]   ;;  %v1429_v13 = vld [vmem:[%s1791_s1 + $0x10] sm:$0xff]  }
  0x10   : > { %v1436_v11 = vld [vmem:[%s1582_s15 + $0x4] ss:$8 sps:$4 sm:$0xff]   ;;  %v1434_v18 = vld [vmem:[%s1582_s15] ss:$8 sps:$4 sm:$0xff]   ;;  %v1440_v20 = vld [vmem:[%s1582_s15 + $0x14] ss:$8 sps:$4 sm:$0xff]  }
  0x11   : > { %v1439_v12 = vld [vmem:[%s1582_s15 + $0x84] ss:$8 sps:$4 sm:$0xff]   ;;  %622 = vmatprep.mubr.bf16.mxu0 %v1436_v11  ;;  %v1437_v19 = vld [vmem:[%s1582_s15 + $0x80] ss:$8 sps:$4 sm:$0xff]   ;;  %v1442_v21 = vld [vmem:[%s1582_s15 + $0x94] ss:$8 sps:$4 sm:$0xff]  }
  0x12   : > { %1269 = vmatpush3.bf16.msra.mxu0 %v1421_v3  ;;  %1387 = vmatpush3.bf16.msra.mxu1 %v1421_v3  ;;  %v1430_v14 = vld [vmem:[%s1791_s1 + $0x48] sm:$0xff]   ;;  %v1432_v16 = vld [vmem:[%s1791_s1 + $0x40] sm:$0xff]   ;;  %v1444_v22 = vld [vmem:[%s1582_s15 + $0x10] ss:$8 sps:$4 sm:$0xff]  }
  0x13   : > { %1270 = vmatprep.subr.bf16.mxu0 %v1422_v4  ;;  %1380 = vmatprep.subr.bf16.mxu1 %v1422_v4  ;;  %v1431_v15 = vld [vmem:[%s1791_s1 + $0x8] sm:$0xff]   ;;  %v1433_v17 = vld [vmem:[%s1791_s1] sm:$0xff]   ;;  %v1445_v23 = vld [vmem:[%s1582_s15 + $0x90] ss:$8 sps:$4 sm:$0xff]  }
  0x14   : > { %686 = vmatprep.mubr.bf16.mxu1 %v1439_v12  ;;  %v1446_v24 = vld [vmem:[%s1582_s15 + $0x24] ss:$8 sps:$4 sm:$0xff]   ;;  %v1450_v26 = vld [vmem:[%s1582_s15 + $0x20] ss:$8 sps:$4 sm:$0xff]   ;;  %v1452_v28 = vld [vmem:[%s1582_s15 + $0x34] ss:$8 sps:$4 sm:$0xff]  }
  0x15   : > { %v1448_v25 = vld [vmem:[%s1582_s15 + $0xa4] ss:$8 sps:$4 sm:$0xff]   ;;  %v1451_v27 = vld [vmem:[%s1582_s15 + $0xa0] ss:$8 sps:$4 sm:$0xff]   ;;  %v1454_v29 = vld [vmem:[%s1582_s15 + $0xb4] ss:$8 sps:$4 sm:$0xff]  }
  0x16   : > { %1271 = vmatpush3.bf16.msra.mxu0 %v1423_v5  ;;  %1388 = vmatpush3.bf16.msra.mxu1 %v1423_v5  ;;  %v1456_v30 = vld [vmem:[%s1582_s15 + $0x30] ss:$8 sps:$4 sm:$0xff]   ;;  %v1458_v32 = vld [vmem:[%s1582_s15 + $0x44] ss:$8 sps:$4 sm:$0xff]   ;;  %v1462_v34 = vld [vmem:[%s1582_s15 + $0x40] ss:$8 sps:$4 sm:$0xff]  }
  0x17   : > { %1272 = vmatprep.subr.bf16.mxu0 %v1424_v6  ;;  %1381 = vmatprep.subr.bf16.mxu1 %v1424_v6  ;;  %v1457_v31 = vld [vmem:[%s1582_s15 + $0xb0] ss:$8 sps:$4 sm:$0xff]   ;;  %v1460_v33 = vld [vmem:[%s1582_s15 + $0xc4] ss:$8 sps:$4 sm:$0xff]   ;;  %v1463_v35 = vld [vmem:[%s1582_s15 + $0xc0] ss:$8 sps:$4 sm:$0xff]  }
  0x18   : > { %v1464_v36 = vld [vmem:[%s1582_s15 + $0x54] ss:$8 sps:$4 sm:$0xff]   ;;  %v1468_v38 = vld [vmem:[%s1582_s15 + $0x50] ss:$8 sps:$4 sm:$0xff]   ;;  %v1470_v40 = vld [vmem:[%s1582_s15 + $0x64] ss:$8 sps:$4 sm:$0xff]  }
  0x19   : > { %v1466_v37 = vld [vmem:[%s1582_s15 + $0xd4] ss:$8 sps:$4 sm:$0xff]   ;;  %v1469_v39 = vld [vmem:[%s1582_s15 + $0xd0] ss:$8 sps:$4 sm:$0xff]   ;;  %v1472_v41 = vld [vmem:[%s1582_s15 + $0xe4] ss:$8 sps:$4 sm:$0xff]  }
  0x1a   : > { %1273 = vmatpush3.bf16.msra.mxu0 %v1425_v7  ;;  %1389 = vmatpush3.bf16.msra.mxu1 %v1425_v7  ;;  %v1474_v42 = vld [vmem:[%s1582_s15 + $0x60] ss:$8 sps:$4 sm:$0xff]   ;;  %v1476_v44 = vld [vmem:[%s1582_s15 + $0x74] ss:$8 sps:$4 sm:$0xff]   ;;  %v1480_v46 = vld [vmem:[%s1582_s15 + $0x70] ss:$8 sps:$4 sm:$0xff]  }
  0x1b   : > { %1274 = vmatprep.subr.bf16.mxu0 %v1426_v8  ;;  %1382 = vmatprep.subr.bf16.mxu1 %v1426_v8  ;;  %v1475_v43 = vld [vmem:[%s1582_s15 + $0xe0] ss:$8 sps:$4 sm:$0xff]   ;;  %v1478_v45 = vld [vmem:[%s1582_s15 + $0xf4] ss:$8 sps:$4 sm:$0xff]   ;;  %v1481_v47 = vld [vmem:[%s1582_s15 + $0xf0] ss:$8 sps:$4 sm:$0xff]   ;;  %s1657_s15 = scalar_lea.vmem %s1794_s4, %s1148_s12 }
  0x1c   : > { %v1640_v51 = vld [vmem:[%s1792_s2] ss:$0 sm:$0xff] }
  0x1d   : > { %v1645_v55 = vld [vmem:[%s1793_s3] ss:$0 sm:$0xff] }
  0x1e   : > { %1275 = vmatpush3.bf16.msra.mxu0 %v1427_v9  ;;  %1390 = vmatpush3.bf16.msra.mxu1 %v1427_v9 }
  0x1f   : > { %1276 = vmatprep.subr.bf16.mxu0 %v1428_v10  ;;  %1383 = vmatprep.subr.bf16.mxu1 %v1428_v10 }
  0x22   : > { %1277 = vmatpush3.bf16.msra.mxu0 %v1429_v13  ;;  %1391 = vmatpush3.bf16.msra.mxu1 %v1429_v13 }
  0x23   : > { %1278 = vmatprep.subr.bf16.mxu0 %v1430_v14  ;;  %1384 = vmatprep.subr.bf16.mxu1 %v1430_v14 }
  0x26   : > { %1279 = vmatpush3.bf16.msra.mxu0 %v1431_v15  ;;  %1392 = vmatpush3.bf16.msra.mxu1 %v1431_v15 }
  0x27   : > { %1280 = vmatprep.subr.bf16.mxu0 %v1432_v16  ;;  %1385 = vmatprep.subr.bf16.mxu1 %v1432_v16 }
  0x2a   : > { %1281 = vmatpush3.bf16.msra.mxu0 %v1433_v17  ;;  %1393 = vmatpush3.bf16.msra.mxu1 %v1433_v17 }
  0x2d   : > { %623 = vmatmul.mubr.bf16.vlgmr.msra.gmra.mxu0 %v1434_v18  ;;  %687 = vmatmul.mubr.bf16.vlgmr.msra.gmra.mxu1 %v1437_v19 }
  0x2e   : > { %630 = vmatprep.mubr.bf16.mxu0 %v1440_v20  ;;  %694 = vmatprep.mubr.bf16.mxu1 %v1442_v21 }
  0x35   : > { %631 = vmatmul.mubr.bf16.gmra.mxu0 %v1444_v22  ;;  %695 = vmatmul.mubr.bf16.gmra.mxu1 %v1445_v23 }
  0x36   : > { %638 = vmatprep.mubr.bf16.mxu0 %v1446_v24  ;;  %702 = vmatprep.mubr.bf16.mxu1 %v1448_v25 }
  0x3d   : > { %639 = vmatmul.mubr.bf16.gmra.mxu0 %v1450_v26  ;;  %703 = vmatmul.mubr.bf16.gmra.mxu1 %v1451_v27 }
  0x3e   : > { %646 = vmatprep.mubr.bf16.mxu0 %v1452_v28  ;;  %710 = vmatprep.mubr.bf16.mxu1 %v1454_v29 }
  0x45   : > { %647 = vmatmul.mubr.bf16.gmra.mxu0 %v1456_v30  ;;  %711 = vmatmul.mubr.bf16.gmra.mxu1 %v1457_v31 }
  0x46   : > { %654 = vmatprep.mubr.bf16.mxu0 %v1458_v32  ;;  %718 = vmatprep.mubr.bf16.mxu1 %v1460_v33 }
  0x4d   : > { %655 = vmatmul.mubr.bf16.gmra.mxu0 %v1462_v34  ;;  %719 = vmatmul.mubr.bf16.gmra.mxu1 %v1463_v35 }
  0x4e   : > { %662 = vmatprep.mubr.bf16.mxu0 %v1464_v36  ;;  %726 = vmatprep.mubr.bf16.mxu1 %v1466_v37 }
  0x55   : > { %663 = vmatmul.mubr.bf16.gmra.mxu0 %v1468_v38  ;;  %727 = vmatmul.mubr.bf16.gmra.mxu1 %v1469_v39 }
  0x56   : > { %670 = vmatprep.mubr.bf16.mxu0 %v1470_v40  ;;  %734 = vmatprep.mubr.bf16.mxu1 %v1472_v41 }
  0x5d   : > { %671 = vmatmul.mubr.bf16.gmra.mxu0 %v1474_v42  ;;  %735 = vmatmul.mubr.bf16.gmra.mxu1 %v1475_v43 }
  0x5e   : > { %678 = vmatprep.mubr.bf16.mxu0 %v1476_v44  ;;  %742 = vmatprep.mubr.bf16.mxu1 %v1478_v45 }
  0x65   : > { %679 = vmatmul.mubr.bf16.gmra.mxu0 %v1480_v46  ;;  %743 = vmatmul.mubr.bf16.gmra.mxu1 %v1481_v47 }
  0xed   : > { %v1282_v48 = vpop.f32.mrf.mxu0  ;;  %v1330_v49 = vpop.f32.mrf.mxu1 }
  0xef   : > { %v1283_v50 = vpop.f32.mrf.mxu0  ;;  %v1331_v52 = vpop.f32.mrf.mxu1 }
  0xf0   : > { %v1284_v53 = vadd.f32 %v1283_v50, %v1282_v48  ;;  %v1332_v54 = vadd.f32 %v1331_v52, %v1330_v49 }
  0xf1   : > { %v1285_v56 = vpop.f32.mrf.mxu0  ;;  %v1333_v57 = vpop.f32.mrf.mxu1 }
  0xf2   : > { %v758_v58 = vmul.f32 %v1284_v53, %v1640_v51  ;;  %v774_v59 = vmul.f32 %v1332_v54, %v1640_v51 }
  0xf3   : > { %v1286_v60 = vpop.f32.mrf.mxu0  ;;  %v1334_v61 = vpop.f32.mrf.mxu1 }
  0xf4   : > { %v797_v62 = vadd.f32 %v1645_v55, %v758_v58  ;;  %v813_v63 = vadd.f32 %v1645_v55, %v774_v59  ;;  %v1287_v0 = vadd.f32 %v1286_v60, %v1285_v56  ;;  %v1335_v1 = vadd.f32 %v1334_v61, %v1333_v57 }
  0xf5   : > { %v1288_v2 = vpop.f32.mrf.mxu0  ;;  %v1336_v3 = vpop.f32.mrf.mxu1 }
  0xf6   : > { %v829_v4 = vmax.f32 %v797_v62, 0.0  ;;  %v845_v5 = vmax.f32 %v813_v63, 0.0  ;;  %v759_v6 = vmul.f32 %v1287_v0, %v1640_v51  ;;  %v775_v7 = vmul.f32 %v1335_v1, %v1640_v51 }
  0xf7   : > { %v1289_v8 = vpop.f32.mrf.mxu0  ;;  %v1337_v9 = vpop.f32.mrf.mxu1 }
  0xf8   : > { %v1234_v10 = vpack.c.bf16 %v829_v4, %v829_v4  ;;  %v1250_v11 = vpack.c.bf16 %v845_v5, %v845_v5  ;;  %v798_v12 = vadd.f32 %v1645_v55, %v759_v6  ;;  %v814_v13 = vadd.f32 %v1645_v55, %v775_v7 }
  0xf9   : > { %v1290_v14 = vadd.f32 %v1289_v8, %v1288_v2  ;;  %v1338_v15 = vadd.f32 %v1337_v9, %v1336_v3  ;;  %v1291_v16 = vpop.f32.mrf.mxu0  ;;  %v1339_v17 = vpop.f32.mrf.mxu1 }
  0xfa   : > { %990 = vst.msk [vmem:[%s1657_s15] sm:$0xf] %vm989_vm0, %v1234_v10  ;;  %1006 = vst.msk [vmem:[%s1657_s15 + $0x40] sm:$0xf] %vm989_vm0, %v1250_v11  ;;  %v830_v18 = vmax.f32 %v798_v12, 0.0  ;;  %v846_v19 = vmax.f32 %v814_v13, 0.0 }
  0xfb   : > { %v760_v20 = vmul.f32 %v1290_v14, %v1640_v51  ;;  %v776_v21 = vmul.f32 %v1338_v15, %v1640_v51  ;;  %v1292_v22 = vpop.f32.mrf.mxu0  ;;  %v1340_v23 = vpop.f32.mrf.mxu1 }
  0xfc   : > { %v1235_v24 = vpack.c.bf16 %v830_v18, %v830_v18  ;;  %v1251_v25 = vpack.c.bf16 %v846_v19, %v846_v19  ;;  %v1293_v26 = vadd.f32 %v1292_v22, %v1291_v16  ;;  %v1341_v27 = vadd.f32 %v1340_v23, %v1339_v17 }
  0xfd   : > { %v799_v28 = vadd.f32 %v1645_v55, %v760_v20  ;;  %v815_v29 = vadd.f32 %v1645_v55, %v776_v21  ;;  %v1294_v30 = vpop.f32.mrf.mxu0  ;;  %v1342_v31 = vpop.f32.mrf.mxu1 }
  0xfe   : > { %991 = vst.msk [vmem:[%s1657_s15 + $0x4] sm:$0xf] %vm989_vm0, %v1235_v24  ;;  %1007 = vst.msk [vmem:[%s1657_s15 + $0x44] sm:$0xf] %vm989_vm0, %v1251_v25  ;;  %v761_v32 = vmul.f32 %v1293_v26, %v1640_v51  ;;  %v777_v33 = vmul.f32 %v1341_v27, %v1640_v51 }
  0xff   : > { %v831_v34 = vmax.f32 %v799_v28, 0.0  ;;  %v847_v35 = vmax.f32 %v815_v29, 0.0  ;;  %v1295_v36 = vpop.f32.mrf.mxu0  ;;  %v1343_v37 = vpop.f32.mrf.mxu1 }
 0x100   : > { %v800_v38 = vadd.f32 %v1645_v55, %v761_v32  ;;  %v816_v39 = vadd.f32 %v1645_v55, %v777_v33  ;;  %v1296_v40 = vadd.f32 %v1295_v36, %v1294_v30  ;;  %v1344_v41 = vadd.f32 %v1343_v37, %v1342_v31 }
 0x101   : > { %v1236_v42 = vpack.c.bf16 %v831_v34, %v831_v34  ;;  %v1252_v43 = vpack.c.bf16 %v847_v35, %v847_v35  ;;  %v1297_v44 = vpop.f32.mrf.mxu0  ;;  %v1345_v45 = vpop.f32.mrf.mxu1 }
 0x102   : > { %v832_v46 = vmax.f32 %v800_v38, 0.0  ;;  %v848_v47 = vmax.f32 %v816_v39, 0.0  ;;  %v762_v48 = vmul.f32 %v1296_v40, %v1640_v51  ;;  %v778_v49 = vmul.f32 %v1344_v41, %v1640_v51 }
 0x103   : > { %992 = vst.msk [vmem:[%s1657_s15 + $0x8] sm:$0xf] %vm989_vm0, %v1236_v42  ;;  %1008 = vst.msk [vmem:[%s1657_s15 + $0x48] sm:$0xf] %vm989_vm0, %v1252_v43  ;;  %v1298_v50 = vpop.f32.mrf.mxu0  ;;  %v1346_v52 = vpop.f32.mrf.mxu1 }
 0x104   : > { %v1237_v53 = vpack.c.bf16 %v832_v46, %v832_v46  ;;  %v1253_v54 = vpack.c.bf16 %v848_v47, %v848_v47  ;;  %v801_v56 = vadd.f32 %v1645_v55, %v762_v48  ;;  %v817_v57 = vadd.f32 %v1645_v55, %v778_v49 }
 0x105   : > { %v1299_v58 = vadd.f32 %v1298_v50, %v1297_v44  ;;  %v1347_v59 = vadd.f32 %v1346_v52, %v1345_v45  ;;  %v1300_v60 = vpop.f32.mrf.mxu0  ;;  %v1348_v61 = vpop.f32.mrf.mxu1 }
 0x106   : > { %993 = vst.msk [vmem:[%s1657_s15 + $0xc] sm:$0xf] %vm989_vm0, %v1237_v53  ;;  %1009 = vst.msk [vmem:[%s1657_s15 + $0x4c] sm:$0xf] %vm989_vm0, %v1253_v54  ;;  %v833_v62 = vmax.f32 %v801_v56, 0.0  ;;  %v849_v63 = vmax.f32 %v817_v57, 0.0 }
 0x107   : > { %v763_v0 = vmul.f32 %v1299_v58, %v1640_v51  ;;  %v779_v1 = vmul.f32 %v1347_v59, %v1640_v51  ;;  %v1301_v2 = vpop.f32.mrf.mxu0  ;;  %v1349_v3 = vpop.f32.mrf.mxu1 }
 0x108   : > { %v1238_v4 = vpack.c.bf16 %v833_v62, %v833_v62  ;;  %v1254_v5 = vpack.c.bf16 %v849_v63, %v849_v63  ;;  %v1302_v6 = vadd.f32 %v1301_v2, %v1300_v60  ;;  %v1350_v7 = vadd.f32 %v1349_v3, %v1348_v61 }
 0x109   : > { %v802_v8 = vadd.f32 %v1645_v55, %v763_v0  ;;  %v818_v9 = vadd.f32 %v1645_v55, %v779_v1  ;;  %v1303_v10 = vpop.f32.mrf.mxu0  ;;  %v1351_v11 = vpop.f32.mrf.mxu1 }
 0x10a   : > { %994 = vst.msk [vmem:[%s1657_s15 + $0x10] sm:$0xf] %vm989_vm0, %v1238_v4  ;;  %1010 = vst.msk [vmem:[%s1657_s15 + $0x50] sm:$0xf] %vm989_vm0, %v1254_v5  ;;  %v764_v12 = vmul.f32 %v1302_v6, %v1640_v51  ;;  %v780_v13 = vmul.f32 %v1350_v7, %v1640_v51 }
 0x10b   : > { %v834_v14 = vmax.f32 %v802_v8, 0.0  ;;  %v850_v15 = vmax.f32 %v818_v9, 0.0  ;;  %v1304_v16 = vpop.f32.mrf.mxu0  ;;  %v1352_v17 = vpop.f32.mrf.mxu1 }
 0x10c   : > { %v803_v18 = vadd.f32 %v1645_v55, %v764_v12  ;;  %v819_v19 = vadd.f32 %v1645_v55, %v780_v13  ;;  %v1305_v20 = vadd.f32 %v1304_v16, %v1303_v10  ;;  %v1353_v21 = vadd.f32 %v1352_v17, %v1351_v11 }
 0x10d   : > { %v1239_v22 = vpack.c.bf16 %v834_v14, %v834_v14  ;;  %v1255_v23 = vpack.c.bf16 %v850_v15, %v850_v15  ;;  %v1306_v24 = vpop.f32.mrf.mxu0  ;;  %v1354_v25 = vpop.f32.mrf.mxu1 }
 0x10e   : > { %v835_v26 = vmax.f32 %v803_v18, 0.0  ;;  %v851_v27 = vmax.f32 %v819_v19, 0.0  ;;  %v765_v28 = vmul.f32 %v1305_v20, %v1640_v51  ;;  %v781_v29 = vmul.f32 %v1353_v21, %v1640_v51 }
 0x10f   : > { %995 = vst.msk [vmem:[%s1657_s15 + $0x14] sm:$0xf] %vm989_vm0, %v1239_v22  ;;  %1011 = vst.msk [vmem:[%s1657_s15 + $0x54] sm:$0xf] %vm989_vm0, %v1255_v23  ;;  %v1307_v30 = vpop.f32.mrf.mxu0  ;;  %v1355_v31 = vpop.f32.mrf.mxu1 }
 0x110   : > { %v1240_v32 = vpack.c.bf16 %v835_v26, %v835_v26  ;;  %v1256_v33 = vpack.c.bf16 %v851_v27, %v851_v27  ;;  %v804_v34 = vadd.f32 %v1645_v55, %v765_v28  ;;  %v820_v35 = vadd.f32 %v1645_v55, %v781_v29 }
 0x111   : > { %v1308_v36 = vadd.f32 %v1307_v30, %v1306_v24  ;;  %v1356_v37 = vadd.f32 %v1355_v31, %v1354_v25  ;;  %v1309_v38 = vpop.f32.mrf.mxu0  ;;  %v1357_v39 = vpop.f32.mrf.mxu1 }
 0x112   : > { %996 = vst.msk [vmem:[%s1657_s15 + $0x18] sm:$0xf] %vm989_vm0, %v1240_v32  ;;  %1012 = vst.msk [vmem:[%s1657_s15 + $0x58] sm:$0xf] %vm989_vm0, %v1256_v33  ;;  %v836_v40 = vmax.f32 %v804_v34, 0.0  ;;  %v852_v41 = vmax.f32 %v820_v35, 0.0 }
 0x113   : > { %v766_v42 = vmul.f32 %v1308_v36, %v1640_v51  ;;  %v782_v43 = vmul.f32 %v1356_v37, %v1640_v51  ;;  %v1310_v44 = vpop.f32.mrf.mxu0  ;;  %v1358_v45 = vpop.f32.mrf.mxu1 }
 0x114   : > { %v1241_v46 = vpack.c.bf16 %v836_v40, %v836_v40  ;;  %v1257_v47 = vpack.c.bf16 %v852_v41, %v852_v41  ;;  %v1311_v48 = vadd.f32 %v1310_v44, %v1309_v38  ;;  %v1359_v49 = vadd.f32 %v1358_v45, %v1357_v39 }
 0x115   : > { %v805_v50 = vadd.f32 %v1645_v55, %v766_v42  ;;  %v821_v52 = vadd.f32 %v1645_v55, %v782_v43  ;;  %v1312_v53 = vpop.f32.mrf.mxu0  ;;  %v1360_v54 = vpop.f32.mrf.mxu1 }
 0x116   : > { %997 = vst.msk [vmem:[%s1657_s15 + $0x1c] sm:$0xf] %vm989_vm0, %v1241_v46  ;;  %1013 = vst.msk [vmem:[%s1657_s15 + $0x5c] sm:$0xf] %vm989_vm0, %v1257_v47  ;;  %v767_v56 = vmul.f32 %v1311_v48, %v1640_v51  ;;  %v783_v57 = vmul.f32 %v1359_v49, %v1640_v51 }
 0x117   : > { %v837_v58 = vmax.f32 %v805_v50, 0.0  ;;  %v853_v59 = vmax.f32 %v821_v52, 0.0  ;;  %v1313_v60 = vpop.f32.mrf.mxu0  ;;  %v1361_v61 = vpop.f32.mrf.mxu1 }
 0x118   : > { %v806_v62 = vadd.f32 %v1645_v55, %v767_v56  ;;  %v822_v63 = vadd.f32 %v1645_v55, %v783_v57  ;;  %v1314_v0 = vadd.f32 %v1313_v60, %v1312_v53  ;;  %v1362_v1 = vadd.f32 %v1361_v61, %v1360_v54 }
 0x119   : > { %v1242_v2 = vpack.c.bf16 %v837_v58, %v837_v58  ;;  %v1258_v3 = vpack.c.bf16 %v853_v59, %v853_v59  ;;  %v1315_v4 = vpop.f32.mrf.mxu0  ;;  %v1363_v5 = vpop.f32.mrf.mxu1 }
 0x11a   : > { %v838_v6 = vmax.f32 %v806_v62, 0.0  ;;  %v854_v7 = vmax.f32 %v822_v63, 0.0  ;;  %v768_v8 = vmul.f32 %v1314_v0, %v1640_v51  ;;  %v784_v9 = vmul.f32 %v1362_v1, %v1640_v51 }
 0x11b   : > { %998 = vst.msk [vmem:[%s1657_s15 + $0x20] sm:$0xf] %vm989_vm0, %v1242_v2  ;;  %1014 = vst.msk [vmem:[%s1657_s15 + $0x60] sm:$0xf] %vm989_vm0, %v1258_v3  ;;  %v1316_v10 = vpop.f32.mrf.mxu0  ;;  %v1364_v11 = vpop.f32.mrf.mxu1 }
 0x11c   : > { %v1243_v12 = vpack.c.bf16 %v838_v6, %v838_v6  ;;  %v1259_v13 = vpack.c.bf16 %v854_v7, %v854_v7  ;;  %v807_v14 = vadd.f32 %v1645_v55, %v768_v8  ;;  %v823_v15 = vadd.f32 %v1645_v55, %v784_v9 }
 0x11d   : > { %v1317_v16 = vadd.f32 %v1316_v10, %v1315_v4  ;;  %v1365_v17 = vadd.f32 %v1364_v11, %v1363_v5  ;;  %v1318_v18 = vpop.f32.mrf.mxu0  ;;  %v1366_v19 = vpop.f32.mrf.mxu1 }
 0x11e   : > { %999 = vst.msk [vmem:[%s1657_s15 + $0x24] sm:$0xf] %vm989_vm0, %v1243_v12  ;;  %1015 = vst.msk [vmem:[%s1657_s15 + $0x64] sm:$0xf] %vm989_vm0, %v1259_v13  ;;  %v839_v20 = vmax.f32 %v807_v14, 0.0  ;;  %v855_v21 = vmax.f32 %v823_v15, 0.0 }
 0x11f   : > { %v769_v22 = vmul.f32 %v1317_v16, %v1640_v51  ;;  %v785_v23 = vmul.f32 %v1365_v17, %v1640_v51  ;;  %v1319_v24 = vpop.f32.mrf.mxu0  ;;  %v1367_v25 = vpop.f32.mrf.mxu1 }
 0x120   : > { %v1244_v26 = vpack.c.bf16 %v839_v20, %v839_v20  ;;  %v1260_v27 = vpack.c.bf16 %v855_v21, %v855_v21  ;;  %v1320_v28 = vadd.f32 %v1319_v24, %v1318_v18  ;;  %v1368_v29 = vadd.f32 %v1367_v25, %v1366_v19 }
 0x121   : > { %v808_v30 = vadd.f32 %v1645_v55, %v769_v22  ;;  %v824_v31 = vadd.f32 %v1645_v55, %v785_v23  ;;  %v1321_v32 = vpop.f32.mrf.mxu0  ;;  %v1369_v33 = vpop.f32.mrf.mxu1 }
 0x122   : > { %1000 = vst.msk [vmem:[%s1657_s15 + $0x28] sm:$0xf] %vm989_vm0, %v1244_v26  ;;  %1016 = vst.msk [vmem:[%s1657_s15 + $0x68] sm:$0xf] %vm989_vm0, %v1260_v27  ;;  %v770_v34 = vmul.f32 %v1320_v28, %v1640_v51  ;;  %v786_v35 = vmul.f32 %v1368_v29, %v1640_v51 }
 0x123   : > { %v840_v36 = vmax.f32 %v808_v30, 0.0  ;;  %v856_v37 = vmax.f32 %v824_v31, 0.0  ;;  %v1322_v38 = vpop.f32.mrf.mxu0  ;;  %v1370_v39 = vpop.f32.mrf.mxu1 }
 0x124   : > { %v809_v40 = vadd.f32 %v1645_v55, %v770_v34  ;;  %v825_v41 = vadd.f32 %v1645_v55, %v786_v35  ;;  %v1323_v42 = vadd.f32 %v1322_v38, %v1321_v32  ;;  %v1371_v43 = vadd.f32 %v1370_v39, %v1369_v33 }
 0x125   : > { %v1245_v44 = vpack.c.bf16 %v840_v36, %v840_v36  ;;  %v1261_v45 = vpack.c.bf16 %v856_v37, %v856_v37  ;;  %v1324_v46 = vpop.f32.mrf.mxu0  ;;  %v1372_v47 = vpop.f32.mrf.mxu1 }
 0x126   : > { %v841_v48 = vmax.f32 %v809_v40, 0.0  ;;  %v857_v49 = vmax.f32 %v825_v41, 0.0  ;;  %v771_v50 = vmul.f32 %v1323_v42, %v1640_v51  ;;  %v787_v52 = vmul.f32 %v1371_v43, %v1640_v51 }
 0x127   : > { %1001 = vst.msk [vmem:[%s1657_s15 + $0x2c] sm:$0xf] %vm989_vm0, %v1245_v44  ;;  %1017 = vst.msk [vmem:[%s1657_s15 + $0x6c] sm:$0xf] %vm989_vm0, %v1261_v45  ;;  %v1325_v53 = vpop.f32.mrf.mxu0  ;;  %v1373_v54 = vpop.f32.mrf.mxu1 }
 0x128   : > { %v1246_v56 = vpack.c.bf16 %v841_v48, %v841_v48  ;;  %v1262_v57 = vpack.c.bf16 %v857_v49, %v857_v49  ;;  %v810_v58 = vadd.f32 %v1645_v55, %v771_v50  ;;  %v826_v59 = vadd.f32 %v1645_v55, %v787_v52 }
 0x129   : > { %v1326_v60 = vadd.f32 %v1325_v53, %v1324_v46  ;;  %v1374_v61 = vadd.f32 %v1373_v54, %v1372_v47  ;;  %v1327_v62 = vpop.f32.mrf.mxu0  ;;  %v1375_v63 = vpop.f32.mrf.mxu1 }
 0x12a   : > { %1002 = vst.msk [vmem:[%s1657_s15 + $0x30] sm:$0xf] %vm989_vm0, %v1246_v56  ;;  %1018 = vst.msk [vmem:[%s1657_s15 + $0x70] sm:$0xf] %vm989_vm0, %v1262_v57  ;;  %v842_v0 = vmax.f32 %v810_v58, 0.0  ;;  %v858_v1 = vmax.f32 %v826_v59, 0.0 }
 0x12b   : > { %v772_v2 = vmul.f32 %v1326_v60, %v1640_v51  ;;  %v788_v3 = vmul.f32 %v1374_v61, %v1640_v51  ;;  %v1328_v4 = vpop.f32.mrf.mxu0  ;;  %v1376_v5 = vpop.f32.mrf.mxu1 }
 0x12c   : > { %v1247_v6 = vpack.c.bf16 %v842_v0, %v842_v0  ;;  %v1263_v7 = vpack.c.bf16 %v858_v1, %v858_v1  ;;  %v1329_v8 = vadd.f32 %v1328_v4, %v1327_v62  ;;  %v1377_v9 = vadd.f32 %v1376_v5, %v1375_v63 }
 0x12d   : > { %v811_v10 = vadd.f32 %v1645_v55, %v772_v2  ;;  %v827_v11 = vadd.f32 %v1645_v55, %v788_v3 }
 0x12e   : > { %1003 = vst.msk [vmem:[%s1657_s15 + $0x34] sm:$0xf] %vm989_vm0, %v1247_v6  ;;  %1019 = vst.msk [vmem:[%s1657_s15 + $0x74] sm:$0xf] %vm989_vm0, %v1263_v7  ;;  %v773_v12 = vmul.f32 %v1329_v8, %v1640_v51  ;;  %v789_v13 = vmul.f32 %v1377_v9, %v1640_v51 }
 0x12f   : > { %v843_v14 = vmax.f32 %v811_v10, 0.0  ;;  %v859_v15 = vmax.f32 %v827_v11, 0.0 }
 0x130   : > { %v812_v16 = vadd.f32 %v1645_v55, %v773_v12  ;;  %v828_v17 = vadd.f32 %v1645_v55, %v789_v13 }
 0x131   : > { %v1248_v18 = vpack.c.bf16 %v843_v14, %v843_v14  ;;  %v1264_v19 = vpack.c.bf16 %v859_v15, %v859_v15 }
 0x132   : > { %v844_v20 = vmax.f32 %v812_v16, 0.0  ;;  %v860_v21 = vmax.f32 %v828_v17, 0.0 }
 0x133   : > { %1004 = vst.msk [vmem:[%s1657_s15 + $0x38] sm:$0xf] %vm989_vm0, %v1248_v18  ;;  %1020 = vst.msk [vmem:[%s1657_s15 + $0x78] sm:$0xf] %vm989_vm0, %v1264_v19 }
 0x134   : > { %v1249_v22 = vpack.c.bf16 %v844_v20, %v844_v20  ;;  %v1265_v23 = vpack.c.bf16 %v860_v21, %v860_v21 }
 0x136   : > { %1005 = vst.msk [vmem:[%s1657_s15 + $0x3c] sm:$0xf] %vm989_vm0, %v1249_v22  ;;  %1021 = vst.msk [vmem:[%s1657_s15 + $0x7c] sm:$0xf] %vm989_vm0, %v1265_v23 }
 0x137 PF: > { %s14_s17 = sadd.s32 1, %s1504_s17   ;;  %s1795_s15 = smov %s1500_s16 }
 0x138   : > { %p11_p5 = scmp.ge.s32.totalorder %s14_s17, 4   ;;  %s1796_s16 = smov %s1798_s18 }
 0x13a   :  { %13 = sbr.rel (!%p11_p5) target bundleno = 2 (0x2), region = 75 }

</bundles_post_ra>
